<compile_context>
chip_gen: v7x
topology: tpu7x:2x2x1
jax: 0.10.0
libtpu: 0.0.40
codegen_flags: <defaults>
</compile_context>

<pallas_src>
import jax
import jax.numpy as jnp
import numpy as np
from jax.experimental import pallas as pl
from jax.experimental.pallas import tpu as pltpu


def attention_kernel(x_ref, w_ref, b_ref, o_ref):
    # x_ref: (TB, S, F)  w_ref: (1, F)  b_ref: (1, S)  o_ref: (TB, F)
    x = x_ref[...].astype(jnp.float32)               # (TB, S, F)
    w = w_ref[...].astype(jnp.float32)               # (1, F)
    b = b_ref[...].astype(jnp.float32)               # (1, S)

    # eij = x @ w done as VPU multiply + lane reduce over F -> (TB, S) directly
    # (no (B, S, 1) temporary / squeeze, no N=1 MXU matmul).
    eij = jnp.sum(x * w[:, None, :], axis=-1)        # (TB, S)
    eij = jnp.tanh(eij + b)                          # EUP tanh

    # tanh bounds eij to (-1, 1) so no max-subtraction is needed (matches PyTorch).
    a = jnp.exp(eij)                                 # (TB, S)
    denom = jnp.sum(a, axis=1, keepdims=True)        # (TB, 1)
    # NOTE: '+ 1e-10' is applied AFTER normalization, exactly as in the PyTorch
    # module (weights sum to 1 + S*1e-10). Intentional -- do not "fix".
    a = a * pl.reciprocal(denom, approx=True) + 1e-10

    # Weighted sum over the step dim: VPU multiply + sublane reduce -> (TB, F).
    out = jnp.sum(x * a[:, :, None], axis=1)         # (TB, F), f32 accumulation
    o_ref[...] = out.astype(o_ref.dtype)


def attention_pallas(x, weight, bias, *, block_batch=None):
    # TODO(synk): the optional `mask` argument of the PyTorch forward is not
    # implemented (the module is used with mask=None).
    B, S, F = x.shape

    w2d = weight.reshape(1, F)
    b2d = bias.reshape(1, S)

    # Pick the batch tile: keep 2 (double buffer) * TB*S*F*itemsize <= ~16 MiB.
    if block_batch is not None:
        tb = int(block_batch)
    else:
        per_row_bytes = S * F * x.dtype.itemsize
        tb = max(1, (16 * 1024 * 1024) // (2 * per_row_bytes))
    if B <= 8:
        tb = B                               # block dim == full dim is always legal
    else:
        tb = min(tb, B)
        tb = max(8, (tb // 8) * 8)           # keep output sublane dim 8-aligned

    grid = (pl.cdiv(B, tb),)

    return pl.pallas_call(
        attention_kernel,
        out_shape=jax.ShapeDtypeStruct((B, F), x.dtype),
        grid=grid,
        in_specs=[
            pl.BlockSpec((tb, S, F), lambda i: (i, 0, 0)),   # streamed x tiles
            pl.BlockSpec((1, F), lambda i: (0, 0)),          # resident weight
            pl.BlockSpec((1, S), lambda i: (0, 0)),          # resident bias
        ],
        out_specs=pl.BlockSpec((tb, F), lambda i: (i, 0)),
        compiler_params=pltpu.CompilerParams(
            dimension_semantics=("parallel",),
            vmem_limit_bytes=32 * 1024 * 1024,
        ),
    )(x, w2d, b2d)


def attention_reference(x, weight, bias):
    B, S, F = x.shape
    eij = (x.reshape(-1, F) @ weight).reshape(B, S)
    eij = eij + bias[None, :]
    eij = jnp.tanh(eij)
    a = jnp.exp(eij)
    a = a / jnp.sum(a, axis=1, keepdims=True) + 1e-10
    return jnp.sum(x * a[..., None], axis=1)


def _make_inputs(key, batch, step_dim, feature_dim):
    kx, kw, kb = jax.random.split(key, 3)
    x = jax.random.normal(kx, (batch, step_dim, feature_dim), dtype=jnp.float32)
    # Xavier-uniform init for weight (feature_dim, 1), as in nn.init.xavier_uniform_.
    bound = float(np.sqrt(6.0 / (feature_dim + 1)))
    weight = jax.random.uniform(kw, (feature_dim, 1), dtype=jnp.float32,
                                minval=-bound, maxval=bound)
    # Bias is a learnable (step_dim,) parameter; use small random values so the
    # bias-add path is actually exercised.
    bias = 0.1 * jax.random.normal(kb, (step_dim,), dtype=jnp.float32)
    return x, weight, bias


if __name__ == "__main__":
    key = jax.random.PRNGKey(0)
    k1, k2 = jax.random.split(key)

    # Main check: lane-dense feature dim (128), batch tiled into 2 grid steps.
    batch, step_dim, feature_dim = 16, 8, 128
    x, weight, bias = _make_inputs(k1, batch, step_dim, feature_dim)
    out = jax.block_until_ready(attention_pallas(x, weight, bias, block_batch=8))
    ref = attention_reference(x, weight, bias)
    # Tolerance accounts for pl.reciprocal(approx=True) in the normalization.
    np.testing.assert_allclose(np.asarray(out), np.asarray(ref),
                               rtol=2e-3, atol=2e-3)

    # Secondary check: feature_dim not a multiple of 128 (full-dim blocks, no
    # padding copies; exercises the masked-store path).
    x2, w2, b2 = _make_inputs(k2, 4, 8, 96)
    out2 = jax.block_until_ready(attention_pallas(x2, w2, b2))
    ref2 = attention_reference(x2, w2, b2)
    np.testing.assert_allclose(np.asarray(out2), np.asarray(ref2),
                               rtol=2e-3, atol=2e-3)

    print("KERNEL_OK")
</pallas_src>

<mosaic_0001>
module attributes {stable_mosaic.version = 11 : i64} {
  func.func @attention_kernel(%arg0: i32, %arg1: memref<8x8x128xf32, #tpu.memory_space<vmem>>, %arg2: memref<1x128xf32, #tpu.memory_space<vmem>>, %arg3: memref<1x8xf32, #tpu.memory_space<vmem>>, %arg4: memref<8x128xf32, #tpu.memory_space<vmem>>) attributes {dimension_semantics = [#tpu.dimension_semantics<parallel>], iteration_bounds = array<i64: 2>, scalar_prefetch = 0 : i64, scratch_operands = 0 : i64, tpu.core_type = #tpu.core_type<tc>, window_params = [{transform_indices = @transform_0, window_bounds = array<i64: 8, 8, 128>}, {pipeline_mode = #tpu.pipeline_mode<synchronous>, transform_indices = @transform_1, window_bounds = array<i64: 1, 128>}, {pipeline_mode = #tpu.pipeline_mode<synchronous>, transform_indices = @transform_2, window_bounds = array<i64: 1, 8>}, {transform_indices = @transform_3, window_bounds = array<i64: 8, 128>}]} {
    %c0 = arith.constant 0 : index
    %c0_0 = arith.constant 0 : index
    %c0_1 = arith.constant 0 : index
    %0 = vector.load %arg1[%c0, %c0_0, %c0_1] : memref<8x8x128xf32, #tpu.memory_space<vmem>>, vector<8x8x128xf32>
    %c0_2 = arith.constant 0 : index
    %c0_3 = arith.constant 0 : index
    %1 = vector.load %arg2[%c0_2, %c0_3] : memref<1x128xf32, #tpu.memory_space<vmem>>, vector<1x128xf32>
    %c0_4 = arith.constant 0 : index
    %c0_5 = arith.constant 0 : index
    %2 = vector.load %arg3[%c0_4, %c0_5] : memref<1x8xf32, #tpu.memory_space<vmem>>, vector<1x8xf32>
    %3 = vector.shape_cast %1 : vector<1x128xf32> to vector<1x1x128xf32>
    %4 = vector.broadcast %3 : vector<1x1x128xf32> to vector<8x8x128xf32>
    %5 = arith.mulf %0, %4 : vector<8x8x128xf32>
    %cst = arith.constant dense<0.000000e+00> : vector<8x8xf32>
    %6 = vector.multi_reduction <add>, %5, %cst [2] : vector<8x8x128xf32> to vector<8x8xf32>
    %7 = vector.broadcast %2 : vector<1x8xf32> to vector<8x8xf32>
    %8 = arith.addf %6, %7 : vector<8x8xf32>
    %9 = math.tanh %8 : vector<8x8xf32>
    %10 = math.exp %9 : vector<8x8xf32>
    %cst_6 = arith.constant dense<0.000000e+00> : vector<8xf32>
    %11 = vector.multi_reduction <add>, %10, %cst_6 [1] : vector<8x8xf32> to vector<8xf32>
    %12 = vector.shape_cast %11 : vector<8xf32> to vector<8x1xf32>
    %13 = tpu.reciprocal %12 {approx = true} : vector<8x1xf32> -> vector<8x1xf32>
    %14 = vector.broadcast %13 : vector<8x1xf32> to vector<8x8xf32>
    %15 = arith.mulf %10, %14 : vector<8x8xf32>
    %cst_7 = arith.constant 1.000000e-10 : f32
    %16 = vector.broadcast %cst_7 : f32 to vector<8x8xf32>
    %17 = arith.addf %15, %16 : vector<8x8xf32>
    %18 = vector.shape_cast %17 : vector<8x8xf32> to vector<8x8x1xf32>
    %19 = vector.broadcast %18 : vector<8x8x1xf32> to vector<8x8x128xf32>
    %20 = arith.mulf %0, %19 : vector<8x8x128xf32>
    %cst_8 = arith.constant dense<0.000000e+00> : vector<8x128xf32>
    %21 = vector.multi_reduction <add>, %20, %cst_8 [1] : vector<8x8x128xf32> to vector<8x128xf32>
    %c0_9 = arith.constant 0 : index
    %c0_10 = arith.constant 0 : index
    %22 = vector.load %arg4[%c0_9, %c0_10] : memref<8x128xf32, #tpu.memory_space<vmem>>, vector<8x128xf32>
    tpu.vector_store %arg4[%c0_9, %c0_10], %21 {strides = array<i32>} : memref<8x128xf32, #tpu.memory_space<vmem>>, vector<8x128xf32>,
    return
  }
  func.func @transform_0(%arg0: i32) -> (i32, i32, i32) {
    %c0_i32 = arith.constant 0 : i32
    %c0_i32_0 = arith.constant 0 : i32
    %c0_i32_1 = arith.constant 0 : i32
    return %arg0, %c0_i32, %c0_i32_0 : i32, i32, i32
  }
  func.func @transform_1(%arg0: i32) -> (i32, i32) {
    %c0_i32 = arith.constant 0 : i32
    %c0_i32_0 = arith.constant 0 : i32
    %c0_i32_1 = arith.constant 0 : i32
    return %c0_i32, %c0_i32_0 : i32, i32
  }
  func.func @transform_2(%arg0: i32) -> (i32, i32) {
    %c0_i32 = arith.constant 0 : i32
    %c0_i32_0 = arith.constant 0 : i32
    %c0_i32_1 = arith.constant 0 : i32
    return %c0_i32, %c0_i32_0 : i32, i32
  }
  func.func @transform_3(%arg0: i32) -> (i32, i32) {
    %c0_i32 = arith.constant 0 : i32
    %c0_i32_0 = arith.constant 0 : i32
    return %arg0, %c0_i32 : i32, i32
  }
}

</mosaic_0001>

<bundles_post_ra>
// kernel: tpu_custom_call.1
= control target key start
LH: loop header
LB: loop body
LE: loop exit
PB: predicated region body
PF: predicated region fallthrough
CT: control target
= control target key end

     0   :  { %8 = vsyncpa [#allocation3], 0  ;;  %s1087_s0 = inlined_call_operand.hbm [shape: f32[16,8,128], index: 0, kind: input, shape index: {}]   ;;  %s1088_s1 = inlined_call_operand.vmem [shape: f32[1,128], index: 1, kind: input, shape index: {}]   ;;  %s1089_s2 = inlined_call_operand.vmem [shape: f32[1,8], index: 2, kind: input, shape index: {}]   ;;  %s1090_s3 = inlined_call_operand.hbm [shape: f32[16,128], index: 3, kind: output, shape index: {}]  }
   0x1   :  { %10 = vsyncpa [#allocation3 + $0x1], 0 }
   0x2   :  { %11 = vsyncpa [#allocation4], 0 }
   0x3   :  { %13 = vsyncpa [#allocation4 + $0x1], 0  ;;  %s835_s12 = smov 0   ;;  %s837_s13 = smov 0  }
   0x4   :  { %s839_s14 = smov 0   ;;  %s841_s15 = smov 0  }
   0x5 LB: > { %s856_s16 = sadd.s32 4294967295, %s808_s15   ;;  %s611_s17 = sadd.s32 4294967294, %s808_s15   ;;  %s808_s15 = sphi %s841_s15, %s1103_s15   ;;  %s804_s14 = sphi %s839_s14, %s1102_s14   ;;  %s800_s13 = sphi %s837_s13, %s1101_s13   ;;  %s796_s12 = sphi %s835_s12, %s1100_s12  }
   0x6   : > { %s860_s18 = sadd.s32 1, %s808_s15   ;;  %s26_s19 = sadd.s32 1, %s804_s14 }
   0x7   : > { %s23_s20 = ssub.s32 %s808_s15, %s860_s18  ;;  %p33_p0 = scmp.ne.s32.totalorder %s804_s14, %s800_s13 }
   0x8   : > { %p24_p1 = scmp.eq.s32.totalorder %s23_s20, 0  ;;  %p34_p2 = scmp.eq.s32.totalorder %s808_s15, 0 }
   0x9   : > { %p39_p3 = scmp.ne.s32.totalorder %s800_s13, %s796_s12  ;;  %p40_p4 = scmp.eq.s32.totalorder %s856_s16, 0 }
   0xa   : > { %s872_s21 = scalar_select %p24_p1, %s804_s14, %s26_s19  }
   0xb   : > { %p874_p5 = por %p34_p2, %p33_p0  ;;  %p878_p6 = por %p40_p4, %p39_p3 }
   0xc   : > { %p105_p7 = scmp.eq.s32.totalorder %s856_s16, 1  ;;  %p111_p8 = scmp.eq.s32.totalorder %s611_s17, 1 }
   0xd   : > { %p639_p10 = scmp.lt.s32.totalorder %s808_s15, 2  ;;  %s137_s26 = sand.u32 1, %s804_s14  }
   0xe   : > { %p885_p11 = por %p105_p7, %p33_p0  ;;  %p889_p12 = por %p111_p8, %p39_p3 }
   0xf   : > { %s626_s27 = sshll.u32 %s808_s15, 10  ;;  %s614_s28 = sshll.u32 %s137_s26, 6 }
  0x10   : > { %s1094_s24 = scalar_select %p885_p11, 1, 0 }
  0x11   : > { %s1095_s25 = scalar_select %p889_p12, 1, 0 }
  0x12   : > { %s898_s4 = scalar_lea.hbm %s1087_s0, %s626_s27  ;;  %s141_s5 = scalar_lea.vmem [#allocation2], %s614_s28 }
  0x13   : > { %s148_s6 = sshll.u32 %s141_s5, 4  ;;  %p902_p13 = pnand %p639_p10, %p874_p5  ;;  %s906_s6 = int_to_ptr.vmem [resolvable:$true] %s148_s6 }
  0x14   : > { %s908_s8 = scalar_lea.sflag [#allocation3], %s137_s26  ;;  %s712_s9 = scalar_lea.hbm %s898_s4, 1024 }
  0x15   : > { %p713_p0 = scmp.ne.s32.totalorder %s898_s4, %s712_s9  ;;  %p714_p1 = pneg %p902_p13 }
  0x16   : > { %s717_s17 = scalar_lea.hbm %s1087_s0, 2048  ;;  %p718_p4 = scmp.lt.u32.totalorder %s898_s4, %s1087_s0 }
  0x17   : > { %p715_p2 = pnand %p714_p1, %p713_p0  ;;  %p719_p5 = scmp.lt.u32.totalorder %s717_s17, %s712_s9 }
  0x18   : > { %p721_p8 = scmp.lt.u32.totalorder %s712_s9, %s898_s4 }
  0x19   : > { %p716_p3 = pneg %p715_p2  ;;  %p720_p7 = por %p719_p5, %p718_p4 }
  0x1b   : > { %p722_p10 = por %p721_p8, %p720_p7 }
  0x1d   : > { %p723_p9 = pnand %p722_p10, %p716_p3 }
  0x1f   : > { %726 = shalt.err (!%p723_p9)
}
  0x20   : > { %s727_s22 = scalar_lea.vmem %s906_s6, 1024  ;;  %s810_s26 = smov [#allocation2]  }
  0x21   : > { %p728_p0 = scmp.ne.s32.totalorder %s906_s6, %s727_s22  ;;  %s732_s27 = sshll.u32 %s810_s26, 4  ;;  %s733_s27 = int_to_ptr.vmem [resolvable:$false] %s732_s27 }
  0x22   : > { %s734_s28 = scalar_lea.vmem %s733_s27, 2048  ;;  %p735_p11 = scmp.lt.s32.totalorder %s906_s6, %s733_s27 }
  0x23   : > { %p730_p2 = pnand %p728_p0, %p714_p1  ;;  %p736_p4 = scmp.lt.s32.totalorder %s734_s28, %s727_s22 }
  0x25   : > { %p731_p12 = pneg %p730_p2  ;;  %p737_p5 = por %p736_p4, %p735_p11 }
  0x27   : > { %p738_p7 = pnand %p737_p5, %p731_p12 }
  0x29   : > { %741 = shalt.err (!%p738_p7)
}
  0x2a   : > { %s811_s29 = smov 128   ;;  %s812_s30 = smov 8  }
  0x2b   : > { %634 = dma.hbm_to_vmem [thread:$0]  (!%p902_p13), %s898_s4, 1024, %s906_s6, %s908_s8, %s811_s29, %s811_s29, %s812_s30  }
  0x2c   : > { %p617_p9 = scmp.ge.s32.totalorder %s808_s15, 1  ;;  %p156_p1 = scmp.lt.s32.totalorder %s808_s15, 3 }
  0x2e   : > { %p157_p3 = pnand %p617_p9, %p156_p1 }
  0x2f   : > { %s939_s5 = sand.u32 (!%p157_p3), 1, %s800_s13  }
  0x30   : > { %160 = sbr.rel (%p157_p3) target bundleno = 737 (0x2e1), region = 32  ;;  %s618_s9 = sshll.u32 (!%p157_p3), %s939_s5, 6 }
  0x31   : > { %s163_s10 = scalar_lea.sflag (!%p157_p3), [#allocation3], %s939_s5  ;;  %s166_s11 = scalar_lea.vmem (!%p157_p3), [#allocation2], %s618_s9 }
  0x37   : > { %787 = dma.done.wait (%p878_p6), %s163_s10, 1024  }
  0x38   : > { %789 = vsyncadd (%p878_p6), %s163_s10, 4294966272  ;;  %v947_v0 = vld [vmem:[%s166_s11] sm:$0xff]  ;;  %v952_v2 = vld [vmem:[%s166_s11 + $0x10] sm:$0xff]  ;;  %v813_v18 = vmov 0   ;;  %v303_v60 = vlaneseq  ;;  %vm337_vm0 = vcmask 1041409   ;;  %vm339_vm1 = vcmask 1042434  }
  0x39   : > { %v620_v1 = vld [vmem:[%s1088_s1] ss:$0 sm:$0xff]  ;;  %v956_v5 = vld [vmem:[%s166_s11 + $0x8] sm:$0xff]  ;;  %v958_v6 = vld [vmem:[%s166_s11 + $0x18] sm:$0xff]  ;;  %677 = vset.pattern.permute.xlu0 %v813_v18  ;;  %676 = vset.pattern.permute.xlu1 %v813_v18  ;;  %vm341_vm2 = vcmask 1043459   ;;  %vm343_vm3 = vcmask 1044484  }
  0x3a   : > { %v206_v3 = vmul.f32 %v620_v1, %v947_v0  ;;  %v208_v4 = vmul.f32 %v620_v1, %v952_v2  ;;  %v207_v7 = vmul.f32 %v620_v1, %v956_v5  ;;  %v209_v8 = vmul.f32 %v620_v1, %v958_v6  ;;  %v962_v9 = vld [vmem:[%s166_s11 + $0x20] sm:$0xff]  ;;  %v964_v10 = vld [vmem:[%s166_s11 + $0x28] sm:$0xff]  ;;  %v968_v13 = vld [vmem:[%s166_s11 + $0x30] sm:$0xff]  ;;  %s619_s8 = sshll.u32 %s939_s5, 3  ;;  %s623_s17 = sshll.u32 %s856_s16, 7 }
  0x3b   : > { %v210_v11 = vmul.f32 %v620_v1, %v962_v9  ;;  %v211_v12 = vmul.f32 %v620_v1, %v964_v10  ;;  %v970_v14 = vld [vmem:[%s166_s11 + $0x38] sm:$0xff]  ;;  %v212_v15 = vmul.f32 %v620_v1, %v968_v13  ;;  %v621_v17 = vld [vmem:[%s1089_s2] ss:$0 sm:$0xff]  ;;  %v304_v62 = vand.u32 127, %v303_v60  ;;  %s188_s19 = scalar_lea.vmem [#allocation5], %s619_s8  ;;  %s1042_s27 = scalar_lea.hbm %s1090_s3, %s623_s17 }
  0x3c   : > { %214 = vadd.xlane.f32.xlu0 %v206_v3  ;;  %218 = vadd.xlane.f32.xlu1 %v208_v4  ;;  %v213_v16 = vmul.f32 %v620_v1, %v970_v14  ;;  %v998_v63 = vshrl.u32 %v303_v60, 7  ;;  %vm345_vm4 = vcmask 1045509   ;;  %vm347_vm5 = vcmask 1046534   ;;  %s541_s20 = sshll.u32 %s188_s19, 4  ;;  %s528_s16 = scalar_lea.sflag [#allocation4], %s939_s5  ;;  %s1044_s20 = int_to_ptr.vmem [resolvable:$true] %s541_s20 }
  0x3d   : > { %vm349_vm6 = vcmask 1047559   ;;  %vm352_vm7 = vcmask 64512   ;;  %s742_s28 = scalar_lea.vmem %s1044_s20, 128  ;;  %p1097_p11 = scmp.ne.s32.totalorder %s1094_s24, 0 }
  0x3e   : > { %v307_v3 = vsub.s32 %v304_v62, %v998_v63  ;;  %p743_p6 = scmp.ne.s32.totalorder %s1044_s20, %s742_s28  ;;  %s814_s29 = smov [#allocation5]  }
  0x3f   : > { %s746_s30 = sshll.u32 %s814_s29, 4  ;;  %s747_s30 = int_to_ptr.vmem [resolvable:$false] %s746_s30 }
  0x40   : > { %216 = vadd.xlane.f32.xlu0 %v207_v7  ;;  %220 = vadd.xlane.f32.xlu1 %v209_v8  ;;  %p744_p12 = pnand %p743_p6, %p1097_p11  ;;  %s748_s9 = scalar_lea.vmem %s747_s30, 256 }
  0x41   : > { %p749_p8 = scmp.lt.s32.totalorder %s1044_s20, %s747_s30  ;;  %p750_p10 = scmp.lt.s32.totalorder %s748_s9, %s742_s28 }
  0x42   : > { %p745_p13 = pneg %p744_p12 }
  0x43   : > { %p751_p0 = por %p750_p10, %p749_p8 }
  0x44   : > { %222 = vadd.xlane.f32.xlu0 %v210_v11  ;;  %224 = vadd.xlane.f32.xlu1 %v211_v12 }
  0x45   : > { %p752_p2 = pnand %p751_p0, %p745_p13 }
  0x48   : > { %226 = vadd.xlane.f32.xlu0 %v212_v15  ;;  %228 = vadd.xlane.f32.xlu1 %v213_v16 }
  0x5e   : > { %236 = vbcast.lane.b32.xlu0 %v621_v17, 256 }
  0xc9   : > { %v215_v19 = vpop.xlane.xlu0 %214  ;;  %v219_v22 = vpop.xlane.xlu1 %218 }
  0xcd   : > { %v217_v20 = vpop.xlane.xlu0 %216  ;;  %v221_v24 = vpop.xlane.xlu1 %220 }
  0xd1   : > { %v223_v21 = vpop.xlane.xlu0 %222  ;;  %v225_v30 = vpop.xlane.xlu1 %224 }
  0xd5   : > { %v227_v23 = vpop.xlane.xlu0 %226  ;;  %v229_v33 = vpop.xlane.xlu1 %228 }
  0xd9   : > { %v237_v25 = vpop.permute.xlu0 %236 }
  0xda   : > { %v239_v26 = vadd.f32 %v237_v25, %v215_v19  ;;  %v240_v27 = vadd.f32 %v237_v25, %v217_v20  ;;  %v242_v28 = vadd.f32 %v237_v25, %v221_v24  ;;  %v241_v29 = vadd.f32 %v237_v25, %v219_v22 }
  0xdb   : > { %v245_v31 = vadd.f32 %v237_v25, %v227_v23  ;;  %v243_v32 = vadd.f32 %v237_v25, %v223_v21  ;;  %v244_v34 = vadd.f32 %v237_v25, %v225_v30  ;;  %v246_v37 = vadd.f32 %v237_v25, %v229_v33 }
  0xdc   : > { %678 = vtanh.f32 %v239_v26  ;;  %v388_v33 = vsub.s32 7, %v998_v63 }
  0xdd   : > { %680 = vtanh.f32 %v240_v27 }
  0xde   : > { %682 = vtanh.f32 %v242_v28 }
  0xdf   : > { %684 = vtanh.f32 %v241_v29 }
  0xe0   : > { %686 = vtanh.f32 %v245_v31 }
  0xe1   : > { %688 = vtanh.f32 %v243_v32 }
  0xe2   : > { %690 = vtanh.f32 %v244_v34  ;;  %v360_v34 = vsub.s32 0, %v998_v63 }
  0xe6   : > { %v679_v35 = vpop.eup %678 }
  0xe7   : > { %v681_v36 = vpop.eup %680  ;;  %v255_v38 = vmul.f32 1.442695, %v679_v35  ;;  %v364_v35 = vsub.s32 1, %v998_v63 }
  0xe8   : > { %v683_v39 = vpop.eup %682  ;;  %v257_v40 = vmul.f32 1.442695, %v681_v36 }
  0xe9   : > { %692 = vpow2.f32 %v255_v38  ;;  %v685_v41 = vpop.eup %684  ;;  %v261_v42 = vmul.f32 1.442695, %v683_v39 }
  0xea   : > { %694 = vtanh.f32 %v246_v37  ;;  %v687_v43 = vpop.eup %686  ;;  %v259_v44 = vmul.f32 1.442695, %v685_v41 }
  0xeb   : > { %696 = vpow2.f32 %v261_v42  ;;  %v267_v45 = vmul.f32 1.442695, %v687_v43  ;;  %v689_v46 = vpop.eup %688  ;;  %v372_v43 = vsub.s32 3, %v998_v63 }
  0xec   : > { %698 = vpow2.f32 %v257_v40  ;;  %v263_v47 = vmul.f32 1.442695, %v689_v46  ;;  %v691_v48 = vpop.eup %690  ;;  %v368_v40 = vsub.s32 2, %v998_v63 }
  0xed   : > { %700 = vpow2.f32 %v267_v45  ;;  %v265_v51 = vmul.f32 1.442695, %v691_v48 }
  0xee   : > { %702 = vpow2.f32 %v259_v44 }
  0xef   : > { %704 = vpow2.f32 %v263_v47 }
  0xf0   : > { %706 = vpow2.f32 %v265_v51 }
  0xf3   : > { %v977_v49 = vpop.eup %692 }
  0xf4   : > { %280 = vperm.xlu1 %676, %v977_v49   ;;  %v695_v50 = vpop.eup %694 }
  0xf5   : > { %v980_v52 = vpop.eup %696  ;;  %v269_v54 = vmul.f32 1.442695, %v695_v50 }
  0xf6   : > { %v982_v53 = vpop.eup %698  ;;  %289 = vperm.xlu0 %677, %v980_v52  }
  0xf7   : > { %v986_v55 = vpop.eup %700  ;;  %708 = vpow2.f32 %v269_v54  ;;  %v376_v54 = vsub.s32 4, %v998_v63 }
  0xf8   : > { %283 = vperm.xlu1 %676, %v982_v53   ;;  %v988_v56 = vpop.eup %702 }
  0xf9   : > { %v992_v57 = vpop.eup %704 }
  0xfa   : > { %298 = vperm.xlu0 %677, %v986_v55   ;;  %v995_v58 = vpop.eup %706 }
  0xfc   : > { %286 = vperm.xlu1 %676, %v988_v56  }
 0x100   : > { %292 = vperm.xlu1 %676, %v992_v57  }
 0x101   : > { %v709_v59 = vpop.eup %708 }
 0x104   : > { %295 = vperm.xlu1 %676, %v995_v58  }
 0x108   : > { %301 = vperm.xlu1 %676, %v709_v59  }
 0x173   : > { %v281_v61 = vpop.permute.xlu1 %280 }
 0x174   : > { %v308_v12 = vrot.slane %v281_v61, %v307_v3  ;;  %v380_v61 = vsub.s32 5, %v998_v63 }
 0x175   : > { %v290_v11 = vpop.permute.xlu0 %289 }
 0x176   : > { %v320_v19 = vrot.slane %v290_v11, %v307_v3 }
 0x177   : > { %v284_v1 = vpop.permute.xlu1 %283 }
 0x178   : > { %v312_v7 = vrot.slane %v284_v1, %v307_v3 }
 0x179   : > { %v299_v21 = vpop.permute.xlu0 %298 }
 0x17a   : > { %v338_v16 = vsel %vm337_vm0, %v312_v7, %v308_v12  ;;  %v332_v26 = vrot.slane %v299_v21, %v307_v3 }
 0x17b   : > { %v287_v4 = vpop.permute.xlu1 %286 }
 0x17c   : > { %v316_v8 = vrot.slane %v287_v4, %v307_v3 }
 0x17e   : > { %v340_v17 = vsel %vm339_vm1, %v316_v8, %v338_v16 }
 0x17f   : > { %v293_v15 = vpop.permute.xlu1 %292  ;;  %v342_v22 = vsel %vm341_vm2, %v320_v19, %v340_v17 }
 0x180   : > { %v324_v18 = vrot.slane %v293_v15, %v307_v3 }
 0x182   : > { %v344_v24 = vsel %vm343_vm3, %v324_v18, %v342_v22 }
 0x183   : > { %v296_v20 = vpop.permute.xlu1 %295 }
 0x184   : > { %v328_v23 = vrot.slane %v296_v20, %v307_v3 }
 0x186   : > { %v346_v25 = vsel %vm345_vm4, %v328_v23, %v344_v24 }
 0x187   : > { %v302_v27 = vpop.permute.xlu1 %301  ;;  %v348_v29 = vsel %vm347_vm5, %v332_v26, %v346_v25 }
 0x188   : > { %v336_v28 = vrot.slane %v302_v27, %v307_v3  ;;  %v384_v3 = vsub.s32 6, %v998_v63 }
 0x18a   : > { %v350_v30 = vsel %vm349_vm6, %v336_v28, %v348_v29 }
 0x18b   : > { %v353_v31 = vsel %vm352_vm7, %v350_v30, 0.0 }
 0x18c   : > { %354 = vadd.xlane.f32.xlu0 %v353_v31 }
 0x219   : > { %v355_v32 = vpop.xlane.xlu0 %354 }
 0x21a   : > { %710 = vrcp.f32 %v355_v32 }
 0x224   : > { %v711_v36 = vpop.eup %710 }
 0x225   : > { %v389_v37 = vrot.slane %v711_v36, %v388_v33  ;;  %v361_v38 = vrot.slane %v711_v36, %v360_v34  ;;  %v365_v39 = vrot.slane %v711_v36, %v364_v35  ;;  %v369_v47 = vrot.slane %v711_v36, %v368_v40 }
 0x226   : > { %v373_v51 = vrot.slane %v711_v36, %v372_v43  ;;  %v381_v1 = vrot.slane %v711_v36, %v380_v61  ;;  %v385_v7 = vrot.slane %v711_v36, %v384_v3 }
 0x227   : > { %v405_v41 = vmul.f32 %v709_v59, %v389_v37  ;;  %v398_v42 = vmul.f32 %v977_v49, %v361_v38  ;;  %v399_v46 = vmul.f32 %v982_v53, %v365_v39  ;;  %v400_v50 = vmul.f32 %v988_v56, %v369_v47 }
 0x228   : > { %v401_v59 = vmul.f32 %v980_v52, %v373_v51  ;;  %v377_v49 = vrot.slane %v711_v36, %v376_v54  ;;  %v403_v56 = vmul.f32 %v995_v58, %v381_v1  ;;  %v404_v11 = vmul.f32 %v986_v55, %v385_v7 }
 0x229   : > { %v413_v44 = vadd.f32 1e-10, %v405_v41  ;;  %v406_v45 = vadd.f32 1e-10, %v398_v42  ;;  %v407_v48 = vadd.f32 1e-10, %v399_v46 }
 0x22a   : > { %v408_v60 = vadd.f32 1e-10, %v400_v50  ;;  %v409_v62 = vadd.f32 1e-10, %v401_v59  ;;  %v402_v53 = vmul.f32 %v992_v57, %v377_v49  ;;  %v411_v8 = vadd.f32 1e-10, %v403_v56 }
 0x22b   : > { %451 = vperm.xlu0 %677, %v413_v44   ;;  %416 = vperm.xlu1 %676, %v406_v45   ;;  %v412_v52 = vadd.f32 1e-10, %v404_v11 }
 0x22c   : > { %v410_v4 = vadd.f32 1e-10, %v402_v53 }
 0x22f   : > { %421 = vperm.xlu1 %676, %v407_v48  }
 0x233   : > { %426 = vperm.xlu1 %676, %v408_v60  }
 0x237   : > { %431 = vperm.xlu1 %676, %v409_v62  }
 0x23b   : > { %436 = vperm.xlu1 %676, %v410_v4  }
 0x23f   : > { %441 = vperm.xlu1 %676, %v411_v8  }
 0x243   : > { %446 = vperm.xlu1 %676, %v412_v52  }
 0x2aa   : > { %v417_v12 = vpop.permute.xlu1 %416  ;;  %v452_v19 = vpop.permute.xlu0 %451 }
 0x2ab   : > { %v454_v57 = vmul.f32 %v417_v12, %v947_v0  ;;  %v461_v22 = vmul.f32 %v452_v19, %v970_v14 }
 0x2ad   : > { %v462_v20 = vrot.slane %v454_v57, 4  ;;  %v504_v0 = vrot.slane %v461_v22, 4 }
 0x2ae   : > { %v422_v15 = vpop.permute.xlu1 %421 }
 0x2af   : > { %v455_v16 = vmul.f32 %v422_v15, %v956_v5  ;;  %v463_v25 = vadd.f32 %v462_v20, %v454_v57  ;;  %v505_v35 = vadd.f32 %v504_v0, %v461_v22 }
 0x2b1   : > { %v468_v18 = vrot.slane %v455_v16, 4  ;;  %v464_v31 = vrot.slane %v463_v25, 2  ;;  %v506_v44 = vrot.slane %v505_v35, 2 }
 0x2b2   : > { %v427_v17 = vpop.permute.xlu1 %426 }
 0x2b3   : > { %v456_v63 = vmul.f32 %v427_v17, %v952_v2  ;;  %v469_v55 = vadd.f32 %v468_v18, %v455_v16  ;;  %v465_v39 = vadd.f32 %v464_v31, %v463_v25  ;;  %v507_v59 = vadd.f32 %v506_v44, %v505_v35 }
 0x2b5   : > { %v474_v58 = vrot.slane %v456_v63, 4  ;;  %v470_v28 = vrot.slane %v469_v55, 2  ;;  %v466_v50 = vrot.slane %v465_v39, 1  ;;  %v508_v56 = vrot.slane %v507_v59, 1 }
 0x2b6   : > { %v432_v21 = vpop.permute.xlu1 %431 }
 0x2b7   : > { %v457_v23 = vmul.f32 %v432_v21, %v958_v6  ;;  %v475_v24 = vadd.f32 %v474_v58, %v456_v63  ;;  %v471_v36 = vadd.f32 %v470_v28, %v469_v55  ;;  %v467_v1 = vadd.f32 %v466_v50, %v465_v39 }
 0x2b8   : > { %v509_v57 = vadd.f32 %v508_v56, %v507_v59 }
 0x2b9   : > { %v480_v26 = vrot.slane %v457_v23, 4  ;;  %v476_v2 = vrot.slane %v475_v24, 2  ;;  %v472_v45 = vrot.slane %v471_v36, 1 }
 0x2ba   : > { %v437_v27 = vpop.permute.xlu1 %436 }
 0x2bb   : > { %v458_v5 = vmul.f32 %v437_v27, %v962_v9  ;;  %v481_v29 = vadd.f32 %v480_v26, %v457_v23  ;;  %v477_v6 = vadd.f32 %v476_v2, %v475_v24  ;;  %v473_v49 = vadd.f32 %v472_v45, %v471_v36 }
 0x2bd   : > { %v486_v30 = vrot.slane %v458_v5, 4  ;;  %v482_v32 = vrot.slane %v481_v29, 2  ;;  %v478_v46 = vrot.slane %v477_v6, 1  ;;  %v518_v7 = vsel %vm337_vm0, %v473_v49, %v467_v1 }
 0x2be   : > { %v442_v33 = vpop.permute.xlu1 %441 }
 0x2bf   : > { %v487_v34 = vadd.f32 %v486_v30, %v458_v5  ;;  %v459_v14 = vmul.f32 %v442_v33, %v964_v10  ;;  %v483_v40 = vadd.f32 %v482_v32, %v481_v29  ;;  %v479_v61 = vadd.f32 %v478_v46, %v477_v6 }
 0x2c1   : > { %v488_v37 = vrot.slane %v487_v34, 2  ;;  %v492_v38 = vrot.slane %v459_v14, 4  ;;  %v484_v10 = vrot.slane %v483_v40, 1  ;;  %v519_v11 = vsel %vm339_vm1, %v479_v61, %v518_v7 }
 0x2c2   : > { %v447_v41 = vpop.permute.xlu1 %446 }
 0x2c3   : > { %v489_v9 = vadd.f32 %v488_v37, %v487_v34  ;;  %v493_v42 = vadd.f32 %v492_v38, %v459_v14  ;;  %v460_v43 = vmul.f32 %v447_v41, %v968_v13  ;;  %v485_v3 = vadd.f32 %v484_v10, %v483_v40 }
 0x2c5   : > { %v494_v47 = vrot.slane %v493_v42, 2  ;;  %v498_v48 = vrot.slane %v460_v43, 4  ;;  %v490_v51 = vrot.slane %v489_v9, 1  ;;  %v520_v12 = vsel %vm341_vm2, %v485_v3, %v519_v11 }
 0x2c7   : > { %v495_v54 = vadd.f32 %v494_v47, %v493_v42  ;;  %v499_v60 = vadd.f32 %v498_v48, %v460_v43  ;;  %v491_v13 = vadd.f32 %v490_v51, %v489_v9 }
 0x2c9   : > { %v496_v62 = vrot.slane %v495_v54, 1  ;;  %v500_v53 = vrot.slane %v499_v60, 2  ;;  %v521_v15 = vsel %vm343_vm3, %v491_v13, %v520_v12 }
 0x2cb   : > { %v501_v4 = vadd.f32 %v500_v53, %v499_v60  ;;  %v497_v8 = vadd.f32 %v496_v62, %v495_v54 }
 0x2cd   : > { %v502_v52 = vrot.slane %v501_v4, 1  ;;  %v522_v17 = vsel %vm345_vm4, %v497_v8, %v521_v15 }
 0x2cf   : > { %v503_v16 = vadd.f32 %v502_v52, %v501_v4 }
 0x2d1   : > { %v523_v63 = vsel %vm347_vm5, %v503_v16, %v522_v17 }
 0x2d2   : > { %v524_v18 = vsel %vm349_vm6, %v509_v57, %v523_v63 }
 0x2d3   : > { %526 = vst [vmem:[%s188_s19] sm:$0xff] %v524_v18 }
 0x2d4   : > { %755 = shalt.err (!%p752_p2)
}
 0x2d5   : > { %s756_s5 = scalar_lea.hbm %s1042_s27, 128  ;;  %s760_s4 = scalar_lea.hbm %s1090_s3, 256 }
 0x2d6   : > { %p757_p4 = scmp.ne.s32.totalorder %s1042_s27, %s756_s5  ;;  %p761_p9 = scmp.lt.u32.totalorder %s1042_s27, %s1090_s3 }
 0x2d7   : > { %p762_p1 = scmp.lt.u32.totalorder %s760_s4, %s756_s5  ;;  %p764_p6 = scmp.lt.u32.totalorder %s756_s5, %s1042_s27 }
 0x2d8   : > { %p758_p5 = pnand %p757_p4, %p1097_p11 }
 0x2d9   : > { %p763_p3 = por %p762_p1, %p761_p9 }
 0x2da   : > { %p759_p7 = pneg %p758_p5 }
 0x2db   : > { %p765_p12 = por %p764_p6, %p763_p3 }
 0x2dd   : > { %p766_p13 = pnand %p765_p12, %p759_p7 }
 0x2df   : > { %769 = shalt.err (!%p766_p13)
}
 0x2e0   : > { %629 = dma.vmem_to_hbm [thread:$0]  (%p1097_p11), %s1044_s20, 128, %s1042_s27, %s528_s16  }
 0x2e1 PF: > { %s553_s7 = sand.u32 1, %s796_s12   ;;  %p1098_p8 = scmp.ne.s32.totalorder %s1095_s25, 0 }
 0x2e2   : > { %p1099_p10 = scmp.ge.s32.totalorder %s808_s15, 2  ;;  %s554_s8 = scalar_lea.sflag [#allocation4], %s553_s7 }
 0x2e4   : > { %p636_p0 = pnand %p1099_p10, %p1098_p8 }
 0x2e6   : > { %791 = dma.done.wait (!%p636_p0), %s554_s8, 128  }
 0x2e7   : > { %793 = vsyncadd (!%p636_p0), %s554_s8, 4294967168  ;;  %p16_p2 = scmp.ge.s32.totalorder %s860_s18, 4   ;;  %s1100_s12 = smov %s800_s13 }
 0x2e8   : > { %s1101_s13 = smov %s804_s14  ;;  %s1102_s14 = smov %s872_s21 }
 0x2e9   : > { %s1103_s15 = smov %s860_s18  ;;  %18 = sbr.rel (!%p16_p2) target bundleno = 5 (0x5), region = 77 }
 0x2f0   :  { %559 = vsyncpa [#allocation3], 1 }
 0x2f1   :  { %561 = vsyncpa [#allocation3 + $0x1], 1 }
 0x2f2   :  { %562 = vsyncpa [#allocation4], 1 }
 0x2f3   :  { %564 = vsyncpa [#allocation4 + $0x1], 1 }

</bundles_post_ra>
